<compile_context>
chip_gen: v7x
topology: tpu7x:2x2x1
jax: 0.10.0
libtpu: 0.0.40
codegen_flags: <defaults>
</compile_context>

<pallas_src>
import functools
from typing import NamedTuple, Optional

import jax
import jax.numpy as jnp
from jax.experimental import pallas as pl
from jax.experimental.pallas import tpu as pltpu

_LANE = 128          # lane width of a vreg
_MAX_BLOCK_ROWS = 512  # sod rows per grid step (512*128*4 B = 256 KiB f32)


class VecSod(NamedTuple):
    vec: jnp.ndarray  # [N, 3]
    sod: jnp.ndarray  # [N]


def _copy_kernel(vec_ref, sod_ref, vec_out_ref, sod_out_ref):
    # Lane-dense identity copy of one tile of each array.
    vec_out_ref[...] = vec_ref[...]
    sod_out_ref[...] = sod_ref[...]


@jax.jit
def _store_impl(vec: jnp.ndarray, sod: jnp.ndarray):
    """Lane-dense, tiled, aliased identity copy through a Pallas kernel."""
    n, c = vec.shape  # static under jit

    # ---- choose tiling (all static Python math) -------------------------
    rows = -(-n // _LANE)                       # sod rows at lane width 128
    block_rows = min(_MAX_BLOCK_ROWS, rows)     # == rows for small N
    grid = -(-rows // block_rows)
    rows_pad = grid * block_rows
    n_pad = rows_pad * _LANE

    # ---- present lane-dense [rows, 128] slabs ---------------------------
    vec_flat = jnp.pad(vec.reshape(-1), (0, c * (n_pad - n)))
    vec2d = vec_flat.reshape(c * rows_pad, _LANE)
    sod2d = jnp.pad(sod, (0, n_pad - n)).reshape(rows_pad, _LANE)

    out_vec2d, out_sod2d = pl.pallas_call(
        _copy_kernel,
        grid=(grid,),
        in_specs=[
            pl.BlockSpec((c * block_rows, _LANE), lambda i: (i, 0)),
            pl.BlockSpec((block_rows, _LANE), lambda i: (i, 0)),
        ],
        out_specs=(
            pl.BlockSpec((c * block_rows, _LANE), lambda i: (i, 0)),
            pl.BlockSpec((block_rows, _LANE), lambda i: (i, 0)),
        ),
        out_shape=(
            jax.ShapeDtypeStruct((c * rows_pad, _LANE), vec.dtype),
            jax.ShapeDtypeStruct((rows_pad, _LANE), sod.dtype),
        ),
        # No new HBM output buffers: write back into the input slabs.
        input_output_aliases={0: 0, 1: 1},
        compiler_params=pltpu.CompilerParams(
            dimension_semantics=("parallel",),
        ),
    )(vec2d, sod2d)

    # ---- strip padding, restore original layout -------------------------
    out_vec = out_vec2d.reshape(-1)[: c * n].reshape(n, c)
    out_sod = out_sod2d.reshape(-1)[:n]
    return out_vec, out_sod


def _pallas_store(vec: jnp.ndarray, sod: jnp.ndarray) -> VecSod:
    if vec.shape[0] == 0:
        # Empty storage (the module's initial state): nothing to copy and a
        # zero-sized pallas_call would not lower — bypass the kernel.
        return VecSod(vec=vec, sod=sod)
    out_vec, out_sod = _store_impl(vec, sod)
    return VecSod(vec=out_vec, sod=out_sod)


class VecSodStrage:
    """JAX/Pallas port of pointneighbor.modules.storage.VecSodStrage."""

    def __init__(self):
        # Empty storage, mirroring torch.tensor([]) (float32, size 0).
        self.vec = jnp.zeros((0, 3), dtype=jnp.float32)
        self.sod = jnp.zeros((0,), dtype=jnp.float32)

    def forward(self, vec_sod: Optional[VecSod] = None) -> VecSod:
        if vec_sod is not None:
            stored = _pallas_store(vec_sod.vec, vec_sod.sod)
            self.vec = stored.vec
            self.sod = stored.sod
        return VecSod(vec=self.vec, sod=self.sod)

    __call__ = forward

    def is_empty(self) -> bool:
        if self.vec.shape[0] == 0:
            assert self.sod.shape[0] == 0
            return True
        else:
            assert self.sod.shape[0] != 0
            return False


if __name__ == "__main__":
    key = jax.random.PRNGKey(0)
    kv, kv2 = jax.random.split(key)

    module = VecSodStrage()
    assert module.is_empty()

    # Case 1: N a multiple of the 128-lane width.
    N1 = 128
    vec1 = jax.random.normal(kv, (N1, 3), dtype=jnp.float32)
    sod1 = jnp.sum(vec1 * vec1, axis=-1)
    out1 = module(VecSod(vec=vec1, sod=sod1))
    jax.block_until_ready(out1.vec)
    jax.block_until_ready(out1.sod)
    assert not module.is_empty()
    assert out1.vec.shape == (N1, 3) and out1.vec.dtype == jnp.float32
    assert out1.sod.shape == (N1,) and out1.sod.dtype == jnp.float32
    assert jnp.array_equal(out1.vec, vec1) and jnp.array_equal(out1.sod, sod1)

    # No-arg call returns the stored tensors.
    out1b = module()
    jax.block_until_ready(out1b.vec)
    assert jnp.array_equal(out1b.vec, vec1) and jnp.array_equal(out1b.sod, sod1)

    # Case 2: N NOT a multiple of 128 (exercises the padding / tail path).
    N2 = 200
    vec2 = jax.random.normal(kv2, (N2, 3), dtype=jnp.float32)
    sod2 = jnp.sum(vec2 * vec2, axis=-1)
    out2 = module(VecSod(vec=vec2, sod=sod2))
    jax.block_until_ready(out2.vec)
    jax.block_until_ready(out2.sod)
    assert out2.vec.shape == (N2, 3) and out2.sod.shape == (N2,)
    assert jnp.array_equal(out2.vec, vec2) and jnp.array_equal(out2.sod, sod2)

    print("KERNEL_OK")
</pallas_src>

<mosaic_0001>
module attributes {stable_mosaic.version = 11 : i64} {
  func.func @_copy_kernel(%arg0: i32, %arg1: memref<3x128xf32, #tpu.memory_space<vmem>>, %arg2: memref<1x128xf32, #tpu.memory_space<vmem>>, %arg3: memref<3x128xf32, #tpu.memory_space<vmem>>, %arg4: memref<1x128xf32, #tpu.memory_space<vmem>>) attributes {dimension_semantics = [#tpu.dimension_semantics<parallel>], iteration_bounds = array<i64: 1>, scalar_prefetch = 0 : i64, scratch_operands = 0 : i64, tpu.core_type = #tpu.core_type<tc>, window_params = [{transform_indices = @transform_0, window_bounds = array<i64: 3, 128>}, {transform_indices = @transform_1, window_bounds = array<i64: 1, 128>}, {transform_indices = @transform_2, window_bounds = array<i64: 3, 128>}, {transform_indices = @transform_3, window_bounds = array<i64: 1, 128>}]} {
    %c0 = arith.constant 0 : index
    %c0_0 = arith.constant 0 : index
    %0 = vector.load %arg1[%c0, %c0_0] : memref<3x128xf32, #tpu.memory_space<vmem>>, vector<3x128xf32>
    %c0_1 = arith.constant 0 : index
    %c0_2 = arith.constant 0 : index
    %1 = vector.load %arg3[%c0_1, %c0_2] : memref<3x128xf32, #tpu.memory_space<vmem>>, vector<3x128xf32>
    tpu.vector_store %arg3[%c0_1, %c0_2], %0 {strides = array<i32>} : memref<3x128xf32, #tpu.memory_space<vmem>>, vector<3x128xf32>,
    %c0_3 = arith.constant 0 : index
    %c0_4 = arith.constant 0 : index
    %2 = vector.load %arg2[%c0_3, %c0_4] : memref<1x128xf32, #tpu.memory_space<vmem>>, vector<1x128xf32>
    %c0_5 = arith.constant 0 : index
    %c0_6 = arith.constant 0 : index
    %3 = vector.load %arg4[%c0_5, %c0_6] : memref<1x128xf32, #tpu.memory_space<vmem>>, vector<1x128xf32>
    tpu.vector_store %arg4[%c0_5, %c0_6], %2 {strides = array<i32>} : memref<1x128xf32, #tpu.memory_space<vmem>>, vector<1x128xf32>,
    return
  }
  func.func @transform_0(%arg0: i32) -> (i32, i32) {
    %c0_i32 = arith.constant 0 : i32
    %c0_i32_0 = arith.constant 0 : i32
    return %arg0, %c0_i32 : i32, i32
  }
  func.func @transform_1(%arg0: i32) -> (i32, i32) {
    %c0_i32 = arith.constant 0 : i32
    %c0_i32_0 = arith.constant 0 : i32
    return %arg0, %c0_i32 : i32, i32
  }
  func.func @transform_2(%arg0: i32) -> (i32, i32) {
    %c0_i32 = arith.constant 0 : i32
    %c0_i32_0 = arith.constant 0 : i32
    return %arg0, %c0_i32 : i32, i32
  }
  func.func @transform_3(%arg0: i32) -> (i32, i32) {
    %c0_i32 = arith.constant 0 : i32
    %c0_i32_0 = arith.constant 0 : i32
    return %arg0, %c0_i32 : i32, i32
  }
}

</mosaic_0001>

<bundles_post_ra>
// kernel: _store_impl.1
= control target key start
LH: loop header
LB: loop body
LE: loop exit
PB: predicated region body
PF: predicated region fallthrough
CT: control target
= control target key end

     0   :  { %s57_s0 = inlined_call_operand.vmem [shape: f32[3,128], index: 0, kind: input, shape index: {}, may-alias: {0,2}]   ;;  %s58_s2 = inlined_call_operand.vmem [shape: f32[3,128], index: 2, kind: output, shape index: {0}, may-alias: {0,2}]   ;;  %s59_s1 = inlined_call_operand.vmem [shape: f32[1,128], index: 1, kind: input, shape index: {}, may-alias: {1,3}]   ;;  %s60_s3 = inlined_call_operand.vmem [shape: f32[1,128], index: 3, kind: output, shape index: {1}, may-alias: {1,3}]  }
   0x1   :  { %v13_v0 = vld [vmem:[%s57_s0] sm:$0x7] }
   0x2   :  { %v15_v1 = vld [vmem:[%s59_s1] sm:$0x1]  ;;  %14 = vst [vmem:[%s58_s2] sm:$0x7] %v13_v0 }
   0x3   :  { %16 = vst [vmem:[%s60_s3] sm:$0x1] %v15_v1 }

</bundles_post_ra>
